<compile_context>
chip_gen: v7x
topology: tpu7x:2x2x1
jax: 0.10.0
libtpu: 0.0.40
codegen_flags: <defaults>
</compile_context>

<pallas_src>
import jax
import jax.numpy as jnp
from jax.experimental import pallas as pl
from jax.experimental.pallas import tpu as pltpu


def _feature_map_kernel(text_ref, image_ref, out_ref):
    # text_ref:  (TB, I)       I on lanes
    # image_ref: (TB, TJ)      TJ on lanes
    # out_ref:   (TB, I, TJ)   (unit output dim squeezed) I sublanes, TJ lanes
    t = text_ref[...].astype(jnp.float32)                        # (TB, I)
    v = image_ref[...].astype(jnp.float32)                       # (TB, TJ)

    # ||t[b,:]||_2 once per batch row; column norm = |v[b,j]| * ||t[b,:]||_2.
    tnorm = jnp.sqrt(jnp.sum(t * t, axis=1, keepdims=True))      # (TB, 1)
    denom = jnp.maximum(jnp.abs(v) * tnorm, 1e-12)               # (TB, TJ)
    # Division stays on the small (TB, TJ) vector; the big slab is a single
    # broadcast multiply on the VPU (a K=1 MXU matmul would be pure waste).
    scale = v / denom                                            # (TB, TJ)

    out_ref[...] = (t[:, :, None] * scale[:, None, :]).astype(out_ref.dtype)


def _round_up(x, m):
    return ((x + m - 1) // m) * m


def _round_down(x, m):
    return (x // m) * m


def _generation_defaults():
    """(tile_bytes, vmem_limit_bytes, want_two_steps) per TPU generation."""
    try:
        kind = jax.devices()[0].device_kind.lower()
    except Exception:  # pragma: no cover - interpret mode / non-TPU fallback
        kind = ""
    if "v7" in kind:
        # 64 MiB physical VMEM per TC; keep both TCs fed.
        return 8 * 1024 * 1024, 32 * 1024 * 1024, True
    if "v5" in kind or "v6" in kind:
        # 128 MiB physical VMEM -> bigger tiles, fewer per-step overheads.
        return 16 * 1024 * 1024, 64 * 1024 * 1024, False
    # Unknown generation: conservative.
    return 8 * 1024 * 1024, 32 * 1024 * 1024, False


def _select_tiles(B, I, J, itemsize, tile_bytes, want_two_steps):
    """Pick (TB, TJ).  TB must be a multiple of 8 or == B, TJ a multiple of
    128 or == J (BlockSpec (8, 128) rule on the 2-D input blocks)."""
    row_bytes = I * J * itemsize                 # one batch row's (I, J) slab
    fit_rows = tile_bytes // max(row_bytes, 1)   # rows per tile at TJ == J

    if J % 128 != 0:
        # Non-128-aligned J: the block must span the full J.
        TJ = J
        if B <= 8 or fit_rows >= B:
            TB = B
        elif fit_rows >= 8:
            TB = _round_down(min(fit_rows, B), 8)
        else:
            TB = 8                               # smallest legal b-tile
    elif fit_rows >= B:
        TB, TJ = B, J                            # whole output in one block
    elif B > 8 and fit_rows >= 8:
        TB, TJ = _round_down(min(fit_rows, B), 8), J   # contiguous (I, J) rows
    else:
        TB = B if B <= 8 else 8
        lane_budget = tile_bytes // (TB * I * itemsize)
        TJ = min(J, max(128, _round_down(lane_budget, 128)))

    # v7x: a (1, 1) grid leaves one TensorCore idle on a store-bound kernel.
    if want_two_steps and pl.cdiv(B, TB) * pl.cdiv(J, TJ) == 1:
        if B >= 16:
            TB = _round_up(pl.cdiv(B, 2), 8)      # even split along B
        elif J % 128 == 0 and J >= 256:
            TJ = _round_up(pl.cdiv(J, 2), 128)    # 2 steps along J
        # else: shape too small to split legally; single step is fine.
    return TB, TJ


def feature_map_generator(text_embedding, image_embedding, *,
                          tile_bytes=None, min_pallas_bytes=1 << 20):
    """Pallas TPU implementation of FeatureMapGenerator.forward.

    text_embedding:  (B, I)
    image_embedding: (B, J)
    returns:         (B, 1, I, J)
    """
    B, I = text_embedding.shape
    B2, J = image_embedding.shape
    assert B == B2, "batch dims must match"
    out_dtype = jnp.result_type(text_embedding.dtype, image_embedding.dtype)
    itemsize = jnp.dtype(out_dtype).itemsize

    # Small-shape fast path: below ~1 MiB the pallas_call fixed cost exceeds
    # the data movement by orders of magnitude; let XLA fuse it instead.
    if B * I * J * itemsize < min_pallas_bytes:
        t = text_embedding.astype(jnp.float32)
        v = image_embedding.astype(jnp.float32)
        shared = jnp.einsum("bi,bj->bij", t, v)
        norm = jnp.sqrt(jnp.sum(shared * shared, axis=1, keepdims=True))
        shared = shared / jnp.maximum(norm, 1e-12)
        return shared[:, None, :, :].astype(out_dtype)

    default_tile, vmem_limit, want_two_steps = _generation_defaults()
    if tile_bytes is None:
        tile_bytes = default_tile

    TB, TJ = _select_tiles(B, I, J, itemsize, tile_bytes, want_two_steps)
    grid = (pl.cdiv(B, TB), pl.cdiv(J, TJ))

    return pl.pallas_call(
        _feature_map_kernel,
        out_shape=jax.ShapeDtypeStruct((B, 1, I, J), out_dtype),
        grid_spec=pltpu.PrefetchScalarGridSpec(
            num_scalar_prefetch=0,
            grid=grid,
            in_specs=[
                pl.BlockSpec((TB, I), lambda b, j: (b, 0)),
                pl.BlockSpec((TB, TJ), lambda b, j: (b, j)),
            ],
            # Unit dim squeezed (None) -> kernel sees (TB, I, TJ); output is
            # written directly in its final (B, 1, I, J) shape, no XLA reshape.
            out_specs=pl.BlockSpec((TB, None, I, TJ), lambda b, j: (b, 0, 0, j)),
        ),
        compiler_params=pltpu.CompilerParams(
            dimension_semantics=("parallel", "parallel"),
            vmem_limit_bytes=vmem_limit,
        ),
    )(text_embedding, image_embedding)


def _reference(text_embedding, image_embedding, eps=1e-12):
    # Pure-JAX reference mirroring torch F.normalize(p=2, dim=1, eps=1e-12).
    shared = jnp.einsum("bi,bj->bij", text_embedding, image_embedding)
    norm = jnp.sqrt(jnp.sum(shared * shared, axis=1, keepdims=True))
    shared = shared / jnp.maximum(norm, eps)
    return shared[:, None, :, :]


if __name__ == "__main__":
    keys = jax.random.split(jax.random.PRNGKey(0), 8)

    # Test 1: module's nominal small shape (B=2, I=16, J=128) -> fast path.
    B, I, J = 2, 16, 128
    t1 = jax.random.normal(keys[0], (B, I), dtype=jnp.float32)
    v1 = jax.random.normal(keys[1], (B, J), dtype=jnp.float32)
    out1 = jax.block_until_ready(feature_map_generator(t1, v1))
    ref1 = _reference(t1, v1)
    assert out1.shape == (B, 1, I, J), out1.shape
    assert jnp.allclose(out1, ref1, atol=1e-5, rtol=1e-5), "mismatch (test 1)"

    # Test 2: same shape forced through the Pallas kernel.
    out2 = jax.block_until_ready(
        feature_map_generator(t1, v1, min_pallas_bytes=0))
    assert out2.shape == (B, 1, I, J), out2.shape
    assert jnp.allclose(out2, ref1, atol=1e-5, rtol=1e-5), "mismatch (test 2)"

    # Test 3: larger shape -> Pallas path with generation-default tiles.
    B3, I3, J3 = 4, 64, 4096
    t3 = jax.random.normal(keys[2], (B3, I3), dtype=jnp.float32)
    v3 = jax.random.normal(keys[3], (B3, J3), dtype=jnp.float32)
    out3 = jax.block_until_ready(feature_map_generator(t3, v3))
    ref3 = _reference(t3, v3)
    assert out3.shape == (B3, 1, I3, J3), out3.shape
    assert jnp.allclose(out3, ref3, atol=1e-5, rtol=1e-5), "mismatch (test 3)"

    # Test 4: small explicit tile budget -> multi-step J grid is exercised.
    out3b = jax.block_until_ready(
        feature_map_generator(t3, v3, tile_bytes=1 << 20))
    assert jnp.allclose(out3b, ref3, atol=1e-5, rtol=1e-5), "mismatch (test 4)"

    # Test 5: non-128-aligned J (falls back to TJ == J), forced through Pallas.
    B5, I5, J5 = 2, 16, 200
    t5 = jax.random.normal(keys[4], (B5, I5), dtype=jnp.float32)
    v5 = jax.random.normal(keys[5], (B5, J5), dtype=jnp.float32)
    out5 = jax.block_until_ready(
        feature_map_generator(t5, v5, min_pallas_bytes=0))
    ref5 = _reference(t5, v5)
    assert out5.shape == (B5, 1, I5, J5), out5.shape
    assert jnp.allclose(out5, ref5, atol=1e-5, rtol=1e-5), "mismatch (test 5)"

    print("KERNEL_OK")
</pallas_src>

<mosaic_0001>
module attributes {stable_mosaic.version = 11 : i64} {
  func.func @_feature_map_kernel(%arg0: i32, %arg1: i32, %arg2: memref<2x16xf32, #tpu.memory_space<vmem>>, %arg3: memref<2x128xf32, #tpu.memory_space<vmem>>, %arg4: memref<2x1x16x128xf32, #tpu.memory_space<vmem>>) attributes {dimension_semantics = [#tpu.dimension_semantics<parallel>, #tpu.dimension_semantics<parallel>], iteration_bounds = array<i64: 1, 1>, scalar_prefetch = 0 : i64, scratch_operands = 0 : i64, tpu.core_type = #tpu.core_type<tc>, window_params = [{transform_indices = @transform_0, window_bounds = array<i64: 2, 16>}, {transform_indices = @transform_1, window_bounds = array<i64: 2, 128>}, {transform_indices = @transform_2, window_bounds = array<i64: 2, 1, 16, 128>}]} {
    %c0 = arith.constant 0 : index
    %c0_0 = arith.constant 0 : index
    %0 = vector.load %arg2[%c0, %c0_0] : memref<2x16xf32, #tpu.memory_space<vmem>>, vector<2x16xf32>
    %c0_1 = arith.constant 0 : index
    %c0_2 = arith.constant 0 : index
    %1 = vector.load %arg3[%c0_1, %c0_2] : memref<2x128xf32, #tpu.memory_space<vmem>>, vector<2x128xf32>
    %2 = arith.mulf %0, %0 : vector<2x16xf32>
    %cst = arith.constant dense<0.000000e+00> : vector<2xf32>
    %3 = vector.multi_reduction <add>, %2, %cst [1] : vector<2x16xf32> to vector<2xf32>
    %4 = vector.shape_cast %3 : vector<2xf32> to vector<2x1xf32>
    %5 = math.sqrt %4 : vector<2x1xf32>
    %6 = math.absf %1 : vector<2x128xf32>
    %7 = vector.broadcast %5 : vector<2x1xf32> to vector<2x128xf32>
    %8 = arith.mulf %6, %7 : vector<2x128xf32>
    %cst_3 = arith.constant 9.99999996E-13 : f32
    %9 = vector.broadcast %cst_3 : f32 to vector<2x128xf32>
    %10 = arith.maximumf %8, %9 : vector<2x128xf32>
    %11 = arith.divf %1, %10 : vector<2x128xf32>
    %12 = vector.shape_cast %0 : vector<2x16xf32> to vector<2x16x1xf32>
    %13 = vector.shape_cast %11 : vector<2x128xf32> to vector<2x1x128xf32>
    %14 = vector.broadcast %12 : vector<2x16x1xf32> to vector<2x16x128xf32>
    %15 = vector.broadcast %13 : vector<2x1x128xf32> to vector<2x16x128xf32>
    %16 = arith.mulf %14, %15 : vector<2x16x128xf32>
    %c0_4 = arith.constant 0 : index
    %c0_5 = arith.constant 0 : index
    %c0_6 = arith.constant 0 : index
    %c0_7 = arith.constant 0 : index
    %17 = vector.load %arg4[%c0_4, %c0_5, %c0_6, %c0_7] : memref<2x1x16x128xf32, #tpu.memory_space<vmem>>, vector<2x1x16x128xf32>
    %18 = vector.shape_cast %17 : vector<2x1x16x128xf32> to vector<2x16x128xf32>
    %19 = vector.shape_cast %16 : vector<2x16x128xf32> to vector<2x1x16x128xf32>
    tpu.vector_store %arg4[%c0_4, %c0_5, %c0_6, %c0_7], %19 {strides = array<i32>} : memref<2x1x16x128xf32, #tpu.memory_space<vmem>>, vector<2x1x16x128xf32>,
    return
  }
  func.func @transform_0(%arg0: i32, %arg1: i32) -> (i32, i32) {
    %c0_i32 = arith.constant 0 : i32
    %c0_i32_0 = arith.constant 0 : i32
    return %arg0, %c0_i32 : i32, i32
  }
  func.func @transform_1(%arg0: i32, %arg1: i32) -> (i32, i32) {
    %c0_i32 = arith.constant 0 : i32
    return %arg0, %arg1 : i32, i32
  }
  func.func @transform_2(%arg0: i32, %arg1: i32) -> (i32, i32, i32, i32) {
    %c0_i32 = arith.constant 0 : i32
    %c0_i32_0 = arith.constant 0 : i32
    %c0_i32_1 = arith.constant 0 : i32
    return %arg0, %c0_i32, %c0_i32_0, %arg1 : i32, i32, i32, i32
  }
}

</mosaic_0001>

<bundles_post_ra>
// kernel: tpu_custom_call.1
= control target key start
LH: loop header
LB: loop body
LE: loop exit
PB: predicated region body
PF: predicated region fallthrough
CT: control target
= control target key end

     0   :  { %7 = vsyncpa [#allocation3], 0  ;;  %s227_s0 = inlined_call_operand.hbm [shape: f32[2,16], index: 0, kind: input, shape index: {}]   ;;  %s228_s1 = inlined_call_operand.vmem [shape: f32[2,128], index: 1, kind: input, shape index: {}]   ;;  %s229_s2 = inlined_call_operand.hbm [shape: f32[2,1,16,128], index: 2, kind: output, shape index: {}]  }
   0x1   :  { %8 = vsyncpa [#allocation4], 0  ;;  %s180_s9 = smov [#allocation2]   ;;  %s132_s13 = scalar_lea.hbm %s227_s0, 32 }
   0x2   :  { %s15_s10 = sshll.u32 %s180_s9, 4  ;;  %p133_p0 = scmp.ne.s32.totalorder %s227_s0, %s132_s13  ;;  %s16_s10 = int_to_ptr.vmem [resolvable:$true] %s15_s10 }
   0x3   :  { %p136_p1 = scmp.lt.u32.totalorder %s132_s13, %s227_s0 }
   0x5   :  { %p138_p2 = pnand %p136_p1, %p133_p0 }
   0x7   :  { %141 = shalt.err (!%p138_p2)
}
   0x8   :  { %s142_s18 = scalar_lea.vmem %s16_s10, 32  ;;  %p147_p4 = scmp.lt.s32.totalorder %s16_s10, %s16_s10 }
   0x9   :  { %p143_p3 = scmp.ne.s32.totalorder %s16_s10, %s142_s18  ;;  %p148_p5 = scmp.lt.s32.totalorder %s142_s18, %s142_s18 }
   0xb   :  { %p149_p6 = por %p148_p5, %p147_p4 }
   0xd   :  { %p150_p7 = pnand %p149_p6, %p143_p3 }
   0xf   :  { %153 = shalt.err (!%p150_p7)
}
  0x10   :  { %18 = dma.hbm_to_vmem [thread:$0]  %s227_s0, 32, %s16_s10, [#allocation3]  }
  0x11   :  { %176 = dma.done.wait [#allocation3], 32  }
  0x12   :  { %177 = vsyncadd [#allocation3], 4294967264  ;;  %v43_v0 = vlaneseq  ;;  %v24_v4 = vld [vmem:[#allocation2] sm:$0x3]  ;;  %vm27_vm0 = vcmask 123904  }
  0x13   :  { %v26_v5 = vmul.f32 %v24_v4, %v24_v4  ;;  %v25_v10 = vld [vmem:[%s228_s1] sm:$0x3]  ;;  %v181_v19 = vmov 1966171168   ;;  %s182_s1 = smov [#allocation5]  }
  0x14   :  { %v44_v1 = vshrl.u32 %v43_v0, 7  ;;  %v38_v13 = vand.u32 2147483647, %v25_v10  ;;  %v67_v20 = vunpack.c.l.s4 %v181_v19  ;;  %s111_s22 = sshll.u32 %s182_s1, 4  ;;  %s112_s22 = int_to_ptr.vmem [resolvable:$true] %s111_s22 }
  0x15   :  { %v28_v7 = vsel %vm27_vm0, %v26_v5, 0.0  ;;  %s154_s23 = scalar_lea.vmem %s112_s22, 512  ;;  %p159_p9 = scmp.lt.s32.totalorder %s112_s22, %s112_s22 }
  0x16   :  { %v45_v2 = vsub.s32 0, %v44_v1  ;;  %v56_v3 = vsub.s32 1, %v44_v1  ;;  %29 = vadd.xlane.f32.xlu0 %v28_v7  ;;  %v68_v21 = vunpack.c.0.s8 %v67_v20  ;;  %p155_p8 = scmp.ne.s32.totalorder %s112_s22, %s154_s23  ;;  %p160_p10 = scmp.lt.s32.totalorder %s154_s23, %s154_s23 }
  0x18   :  { %v46_v6 = vrot.slane %v24_v4, %v45_v2  ;;  %v57_v8 = vrot.slane %v24_v4, %v56_v3  ;;  %v71_v23 = vsub.s32 %v68_v21, %v44_v1  ;;  %p161_p11 = por %p160_p10, %p159_p9 }
  0x1a   :  { %52 = vbcast.lane.b32.xlu1 %v46_v6, 264  ;;  %p162_p12 = pnand %p161_p11, %p155_p8 }
  0x1e   :  { %59 = vbcast.lane.b32.xlu1 %v57_v8, 256 }
  0x22   :  { %63 = vbcast.lane.b32.xlu1 %v57_v8, 264 }
  0x2c   :  { %48 = vbcast.lane.b32.xlu0 %v46_v6, 256 }
  0x8c   :  { %v53_v22 = vpop.permute.xlu1 %52 }
  0x90   :  { %v60_v26 = vpop.permute.xlu1 %59 }
  0x94   :  { %v64_v33 = vpop.permute.xlu1 %63 }
  0xa3   :  { %v30_v9 = vpop.xlane.xlu0 %29 }
  0xa4   :  { %128 = vrsqrt.f32 %v30_v9  ;;  %vm33_vm1 = vcmp.eq.f32.partialorder %v30_v9, inf  ;;  %v36_v14 = vand.u32 2147483648, %v30_v9  ;;  %vm35_vm2 = vcmp.eq.f32.partialorder %v30_v9, 0.0 }
  0xa7   :  { %v49_v30 = vpop.permute.xlu0 %48 }
  0xae   :  { %v129_v11 = vpop.eup %128 }
  0xaf   :  { %v32_v12 = vmul.f32 %v129_v11, %v30_v9 }
  0xb1   :  { %v34_v15 = vsel %vm33_vm1, %v30_v9, %v32_v12 }
  0xb2   :  { %v37_v16 = vsel %vm35_vm2, %v36_v14, %v34_v15 }
  0xb3   :  { %v39_v17 = vmul.f32 %v38_v13, %v37_v16 }
  0xb5   :  { %v40_v18 = vmax.f32 %v39_v17, 1e-12 }
  0xb7   :  { %130 = vrcp.f32 %v40_v18 }
  0xc1   :  { %v131_v24 = vpop.eup %130 }
  0xc2   :  { %v42_v25 = vmul.f32 %v131_v24, %v25_v10 }
  0xc4   :  { %v72_v27 = vrot.slane %v42_v25, %v71_v23 }
  0xc6   :  { %v80_v28 = vrot.slane %v72_v27, %v71_v23  ;;  %v73_v29 = vcombine.high %v72_v27, %v72_v27 }
  0xc8   :  { %v91_v31 = vrot.slane %v80_v28, %v45_v2  ;;  %v87_v32 = vrot.slane %v73_v29, %v71_v23 }
  0xca   :  { %v99_v34 = vmul.f32 %v91_v31, %v53_v22  ;;  %v95_v35 = vrot.slane %v87_v32, %v45_v2  ;;  %v98_v36 = vmul.f32 %v91_v31, %v49_v30 }
  0xcc   :  { %103 = vst [vmem:[#allocation5 + $0x8] sm:$0xff] %v99_v34  ;;  %v100_v37 = vmul.f32 %v95_v35, %v60_v26  ;;  %102 = vst [vmem:[#allocation5] sm:$0xff] %v98_v36  ;;  %v101_v38 = vmul.f32 %v95_v35, %v64_v33 }
  0xce   :  { %104 = vst [vmem:[#allocation5 + $0x10] sm:$0xff] %v100_v37  ;;  %105 = vst [vmem:[#allocation5 + $0x18] sm:$0xff] %v101_v38 }
  0xcf   :  { %165 = shalt.err (!%p162_p12)
}
  0xd0   :  { %s166_s26 = scalar_lea.hbm %s229_s2, 512 }
  0xd1   :  { %p167_p13 = scmp.ne.s32.totalorder %s229_s2, %s166_s26  ;;  %p170_p0 = scmp.lt.u32.totalorder %s166_s26, %s229_s2 }
  0xd3   :  { %p172_p1 = pnand %p170_p0, %p167_p13 }
  0xd5   :  { %175 = shalt.err (!%p172_p1)
}
  0xd6   :  { %s183_s3 = smov 128   ;;  %s184_s4 = smov 8  }
  0xd7   :  { %117 = dma.vmem_to_hbm [thread:$0]  %s112_s22, 512, %s229_s2, [#allocation4], %s183_s3, %s183_s3, %s184_s4  }
  0xd8   :  { %178 = dma.done.wait [#allocation4], 512  }
  0xd9   :  { %179 = vsyncadd [#allocation4], 4294966784 }
  0xda   :  { %121 = vsyncpa [#allocation3], 1 }
  0xdb   :  { %122 = vsyncpa [#allocation4], 1 }

</bundles_post_ra>
